<compile_context>
chip_gen: v7x
topology: tpu7x:2x2x1
jax: 0.10.0
libtpu: 0.0.40
codegen_flags: <defaults>
</compile_context>

<pallas_src>
import jax
import jax.numpy as jnp
from jax.experimental import pallas as pl
from jax.experimental.pallas import tpu as pltpu


def ynet_kernel(w_ref, b_ref, x_ref, o_ref):
    # w_ref: (Cout, Cin) f32 in SMEM   (scalars)
    # b_ref: (Cout,)     f32 in SMEM   (scalars)
    # x_ref: (Cin,  THW) f32 in VMEM   (pixels on lanes)
    # o_ref: (Cout, THW) f32 in VMEM   (pixels on lanes)
    cin = x_ref.shape[0]
    cout = o_ref.shape[0]

    x = x_ref[...]  # (Cin, THW)

    # Tiny channel contraction on the VPU: scalar (SMEM) * vreg FMAs.
    for o in range(cout):
        y = w_ref[o, 0] * x[0:1, :]
        for c in range(1, cin):
            y = y + w_ref[o, c] * x[c:c + 1, :]
        y = y + b_ref[o]                    # bias (scalar broadcast)
        y = jnp.maximum(y, 0.0)             # ReLU  (VPU)
        o_ref[o:o + 1, :] = jnp.sqrt(y)     # sqrt  (EUP slot)


def ynet_forward(x_nchw, weight, bias, *, thw_target=2048):
    """x_nchw: (N, Cin, H, W) f32; weight: (Cout, Cin) f32; bias: (Cout,) f32."""
    N, Cin, H, W = x_nchw.shape
    Cout = weight.shape[0]
    HW = H * W

    # Native NCHW -> (N, Cin, HW): free reshape, pixel axis stays last (lanes).
    x3d = x_nchw.reshape(N, Cin, HW).astype(jnp.float32)

    # Pick a lane-dense pixel tile (multiple of 128) and pad the tail if needed.
    if HW <= thw_target:
        thw = ((HW + 127) // 128) * 128
    else:
        thw = thw_target
    HWp = ((HW + thw - 1) // thw) * thw
    if HWp != HW:
        # Padded pixels compute sqrt(relu(bias)) -> finite; sliced off below.
        x3d = jnp.pad(x3d, ((0, 0), (0, 0), (0, HWp - HW)))

    w = weight.astype(jnp.float32)          # (Cout, Cin) -> SMEM scalars
    b = bias.astype(jnp.float32)            # (Cout,)     -> SMEM scalars

    grid = (N, HWp // thw)

    out3d = pl.pallas_call(
        ynet_kernel,
        out_shape=jax.ShapeDtypeStruct((N, Cout, HWp), jnp.float32),
        grid_spec=pltpu.PrefetchScalarGridSpec(
            num_scalar_prefetch=0,
            grid=grid,
            in_specs=[
                # tiny constants -> resident in SMEM, no per-step DMA
                pl.BlockSpec(memory_space=pltpu.MemorySpace.SMEM),   # weight
                pl.BlockSpec(memory_space=pltpu.MemorySpace.SMEM),   # bias
                # pixel tile: batch dim squeezed, channels on sublanes,
                # pixels on lanes
                pl.BlockSpec((None, Cin, thw), lambda n, j: (n, 0, j)),
            ],
            out_specs=pl.BlockSpec((None, Cout, thw), lambda n, j: (n, 0, j)),
        ),
        compiler_params=pltpu.CompilerParams(
            dimension_semantics=("parallel", "parallel"),
        ),
    )(w, b, x3d)

    # Drop tail padding; (N, Cout, HW) -> NCHW is again a free reshape.
    return out3d[:, :, :HW].reshape(N, Cout, H, W)


if __name__ == "__main__":
    key = jax.random.PRNGKey(0)
    k_x, k_w, k_b = jax.random.split(key, 3)

    N, Cin, H, W = 2, 4, 16, 16
    Cout = 1

    x = jax.random.normal(k_x, (N, Cin, H, W), dtype=jnp.float32)
    # deterministic PyTorch-conv-like init (uniform, scale 1/sqrt(Cin))
    bound = 1.0 / (Cin ** 0.5)
    weight = jax.random.uniform(k_w, (Cout, Cin), jnp.float32, -bound, bound)
    bias = jax.random.uniform(k_b, (Cout,), jnp.float32, -bound, bound)

    out = ynet_forward(x, weight, bias)
    out = jax.block_until_ready(out)

    # pure-JAX reference: 1x1 conv == channel einsum, then ReLU, sqrt
    ref = jnp.einsum("nchw,oc->nohw", x, weight) + bias.reshape(1, Cout, 1, 1)
    ref = jnp.sqrt(jnp.maximum(ref, 0.0))
    assert out.shape == (N, Cout, H, W)
    assert jnp.allclose(out, ref, atol=1e-5, rtol=1e-5)

    print("KERNEL_OK")
</pallas_src>

<mosaic_0001>
module attributes {stable_mosaic.version = 11 : i64} {
  func.func @ynet_kernel(%arg0: i32, %arg1: i32, %arg2: memref<1x4xf32, #tpu.memory_space<smem>>, %arg3: memref<1xf32, #tpu.memory_space<smem>>, %arg4: memref<1x4x256xf32, #tpu.memory_space<vmem>>, %arg5: memref<1x1x256xf32, #tpu.memory_space<vmem>>) attributes {dimension_semantics = [#tpu.dimension_semantics<parallel>, #tpu.dimension_semantics<parallel>], iteration_bounds = array<i64: 2, 1>, scalar_prefetch = 0 : i64, scratch_operands = 0 : i64, tpu.core_type = #tpu.core_type<tc>, window_params = [{transform_indices = @transform_0, window_bounds = array<i64: 1, 4>}, {transform_indices = @transform_1, window_bounds = array<i64: 1>}, {transform_indices = @transform_2, window_bounds = array<i64: 1, 4, 256>}, {transform_indices = @transform_3, window_bounds = array<i64: 1, 1, 256>}]} {
    %c0 = arith.constant 0 : index
    %c0_0 = arith.constant 0 : index
    %c0_1 = arith.constant 0 : index
    %0 = vector.load %arg4[%c0, %c0_0, %c0_1] : memref<1x4x256xf32, #tpu.memory_space<vmem>>, vector<1x4x256xf32>
    %1 = vector.shape_cast %0 : vector<1x4x256xf32> to vector<4x256xf32>
    %c0_2 = arith.constant 0 : index
    %c0_3 = arith.constant 0 : index
    %2 = memref.load %arg2[%c0_2, %c0_3] : memref<1x4xf32, #tpu.memory_space<smem>>
    %3 = vector.extract_strided_slice %1 {offsets = [0, 0], sizes = [1, 256], strides = [1, 1]} : vector<4x256xf32> to vector<1x256xf32>
    %4 = vector.broadcast %2 : f32 to vector<1x256xf32>
    %5 = arith.mulf %4, %3 : vector<1x256xf32>
    %c0_4 = arith.constant 0 : index
    %c1 = arith.constant 1 : index
    %6 = memref.load %arg2[%c0_4, %c1] : memref<1x4xf32, #tpu.memory_space<smem>>
    %7 = vector.extract_strided_slice %1 {offsets = [1, 0], sizes = [1, 256], strides = [1, 1]} : vector<4x256xf32> to vector<1x256xf32>
    %8 = vector.broadcast %6 : f32 to vector<1x256xf32>
    %9 = arith.mulf %8, %7 : vector<1x256xf32>
    %10 = arith.addf %5, %9 : vector<1x256xf32>
    %c0_5 = arith.constant 0 : index
    %c2 = arith.constant 2 : index
    %11 = memref.load %arg2[%c0_5, %c2] : memref<1x4xf32, #tpu.memory_space<smem>>
    %12 = vector.extract_strided_slice %1 {offsets = [2, 0], sizes = [1, 256], strides = [1, 1]} : vector<4x256xf32> to vector<1x256xf32>
    %13 = vector.broadcast %11 : f32 to vector<1x256xf32>
    %14 = arith.mulf %13, %12 : vector<1x256xf32>
    %15 = arith.addf %10, %14 : vector<1x256xf32>
    %c0_6 = arith.constant 0 : index
    %c3 = arith.constant 3 : index
    %16 = memref.load %arg2[%c0_6, %c3] : memref<1x4xf32, #tpu.memory_space<smem>>
    %17 = vector.extract_strided_slice %1 {offsets = [3, 0], sizes = [1, 256], strides = [1, 1]} : vector<4x256xf32> to vector<1x256xf32>
    %18 = vector.broadcast %16 : f32 to vector<1x256xf32>
    %19 = arith.mulf %18, %17 : vector<1x256xf32>
    %20 = arith.addf %15, %19 : vector<1x256xf32>
    %c0_7 = arith.constant 0 : index
    %21 = memref.load %arg3[%c0_7] : memref<1xf32, #tpu.memory_space<smem>>
    %22 = vector.broadcast %21 : f32 to vector<1x256xf32>
    %23 = arith.addf %20, %22 : vector<1x256xf32>
    %cst = arith.constant 0.000000e+00 : f32
    %24 = vector.broadcast %cst : f32 to vector<1x256xf32>
    %25 = arith.maximumf %23, %24 : vector<1x256xf32>
    %26 = math.sqrt %25 : vector<1x256xf32>
    %c0_8 = arith.constant 0 : index
    %c0_9 = arith.constant 0 : index
    %c0_10 = arith.constant 0 : index
    %27 = vector.load %arg5[%c0_8, %c0_9, %c0_10] : memref<1x1x256xf32, #tpu.memory_space<vmem>>, vector<1x1x256xf32>
    %28 = vector.shape_cast %27 : vector<1x1x256xf32> to vector<1x256xf32>
    %29 = vector.shape_cast %26 : vector<1x256xf32> to vector<1x1x256xf32>
    tpu.vector_store %arg5[%c0_8, %c0_9, %c0_10], %29 {strides = array<i32>} : memref<1x1x256xf32, #tpu.memory_space<vmem>>, vector<1x1x256xf32>,
    return
  }
  func.func @transform_0(%arg0: i32, %arg1: i32) -> (i32, i32) {
    %c0_i32 = arith.constant 0 : i32
    %c0_i32_0 = arith.constant 0 : i32
    %c0_i32_1 = arith.constant 0 : i32
    return %c0_i32, %c0_i32_0 : i32, i32
  }
  func.func @transform_1(%arg0: i32, %arg1: i32) -> i32 {
    %c0_i32 = arith.constant 0 : i32
    %c0_i32_0 = arith.constant 0 : i32
    return %c0_i32 : i32
  }
  func.func @transform_2(%arg0: i32, %arg1: i32) -> (i32, i32, i32) {
    %c0_i32 = arith.constant 0 : i32
    %c0_i32_0 = arith.constant 0 : i32
    return %arg0, %c0_i32, %arg1 : i32, i32, i32
  }
  func.func @transform_3(%arg0: i32, %arg1: i32) -> (i32, i32, i32) {
    %c0_i32 = arith.constant 0 : i32
    %c0_i32_0 = arith.constant 0 : i32
    return %arg0, %c0_i32, %arg1 : i32, i32, i32
  }
}

</mosaic_0001>

<bundles_post_ra>
// kernel: tpu_custom_call.1
= control target key start
LH: loop header
LB: loop body
LE: loop exit
PB: predicated region body
PF: predicated region fallthrough
CT: control target
= control target key end

     0   :  { %s856_s0 = inlined_call_operand.vmem [shape: f32[1,4], index: 0, kind: input, shape index: {}]   ;;  %s857_s1 = inlined_call_operand.<no memory space> [shape: f32[1], index: 1, kind: input, shape index: {}]   ;;  %s858_s2 = inlined_call_operand.hbm [shape: f32[2,4,256], index: 2, kind: input, shape index: {}]   ;;  %s859_s3 = inlined_call_operand.hbm [shape: f32[2,1,256], index: 3, kind: output, shape index: {}]  }
   0x1   :  { %8 = sst [smem:[#allocation2]] %s857_s1 }
   0x2   :  { %9 = vsyncpa [#allocation6], 0 }
   0x3   :  { %10 = vsyncpa [#allocation4], 0 }
   0x4   :  { %12 = vsyncpa [#allocation4 + $0x1], 0 }
   0x5   :  { %13 = vsyncpa [#allocation5], 0 }
   0x6   :  { %15 = vsyncpa [#allocation5 + $0x1], 0  ;;  %s656_s14 = smov 0   ;;  %s658_s15 = smov 0  }
   0x7   :  { %s660_s16 = smov 0   ;;  %s662_s17 = smov 0  }
   0x8   :  { %s664_s18 = smov 0   ;;  %s666_s19 = smov 0  }
   0x9 LB: > { %s395_s1 = sadd.s32 4294967295, %s627_s19   ;;  %s396_s20 = sadd.s32 4294967294, %s627_s19   ;;  %s627_s19 = sphi %s666_s19, %s21_s19   ;;  %s623_s18 = sphi %s664_s18, %s881_s18   ;;  %s619_s17 = sphi %s662_s17, %s880_s17   ;;  %s615_s16 = sphi %s660_s16, %s879_s16   ;;  %s611_s15 = sphi %s658_s15, %s878_s15   ;;  %s607_s14 = sphi %s656_s14, %s877_s14  }
   0xa   : > { %p97_p0 = scmp.ne.s32.totalorder %s611_s15, %s607_s14  ;;  %p690_p1 = scmp.eq.s32.totalorder %s395_s1, 0 }
   0xb   : > { %p694_p2 = scmp.eq.s32.totalorder %s395_s1, 1  ;;  %p129_p3 = scmp.eq.s32.totalorder %s396_s20, 1 }
   0xc   : > { %s864_s21 = scalar_select %p690_p1, 1, 0 }
   0xd   : > { %p700_p4 = por %p690_p1, %p97_p0  ;;  %p397_p5 = scmp.ge.s32.totalorder %s627_s19, 1 }
   0xe   : > { %p705_p6 = por %p129_p3, %p97_p0  ;;  %p136_p7 = scmp.lt.s32.totalorder %s627_s19, 3 }
   0xf   : > { %s866_s23 = scalar_select %p700_p4, 1, 0 }
  0x10   : > { %s867_s24 = scalar_select %p705_p6, 1, 0 }
  0x11   : > { %s149_s27 = sshll.u32 %s856_s0, 4  ;;  %p713_p8 = pnand %p397_p5, %p136_p7  ;;  %s150_s27 = int_to_ptr.vmem [resolvable:$true] %s149_s27 }
  0x12   : > { %s33_s30 = sadd.s32 1, %s623_s18  ;;  %s84_s4 = sadd.s32 1, %s615_s16 }
  0x13   : > { %p428_p10 = pneg %p713_p8  ;;  %p35_p12 = scmp.ge.s32.totalorder %s33_s30, 2 }
  0x14   : > { %s496_s5 = scalar_lea.vmem %s150_s27, 16  ;;  %p504_p7 = scmp.lt.s32.totalorder %s150_s27, %s150_s27 }
  0x15   : > { %p722_p11 = pnand %p428_p10, %p690_p1  ;;  %p497_p13 = scmp.ne.s32.totalorder %s150_s27, %s496_s5 }
  0x16   : > { %p505_p6 = scmp.lt.s32.totalorder %s496_s5, %s496_s5 }
  0x17   : > { %p498_p0 = pneg %p722_p11 }
  0x18   : > { %p506_p9 = por %p505_p6, %p504_p7 }
  0x19   : > { %p499_p3 = pnand %p498_p0, %p497_p13 }
  0x1b   : > { %p500_p5 = pneg %p499_p3 }
  0x1d   : > { %p507_p4 = pnand %p506_p9, %p500_p5 }
  0x1f   : > { %510 = shalt.err (!%p507_p4)
}
  0x20   : > { %s629_s6 = smov [#allocation3]   ;;  %s883_s30 = smov (%p35_p12, %s33_s30), 0 }
  0x21   : > { %431 = dma.vmem_to_smem (!%p722_p11), %s150_s27, 16, %s629_s6, [#allocation6]  }
  0x22   : > { %p91_p10 = scmp.ne.s32.totalorder %s615_s16, %s611_s15  ;;  %p92_p6 = scmp.eq.s32.totalorder %s627_s19, 0 }
  0x23   : > { %s79_s7 = ssub.s32 %s623_s18, %s883_s30  ;;  %p441_p4 = scmp.lt.s32.totalorder %s627_s19, 2 }
  0x24   : > { %p82_p9 = scmp.eq.s32.totalorder %s79_s7, 0  ;;  %p93_p13 = por %p92_p6, %p91_p10 }
  0x25   : > { %p742_p0 = por %p694_p2, %p91_p10  ;;  %s163_s9 = sand.u32 1, %s615_s16  }
  0x26   : > { %s748_s10 = scalar_select %p82_p9, %s615_s16, %s84_s4  }
  0x27   : > { %s870_s8 = scalar_select %p742_p0, 1, 0 }
  0x28   : > { %s400_s11 = sshll.u32 %s163_s9, 3  ;;  %s418_s12 = sshll.u32 %s623_s18, 7 }
  0x29   : > { %s754_s20 = scalar_lea.hbm %s858_s2, %s418_s12  ;;  %s167_s25 = scalar_lea.vmem [#allocation7], %s400_s11 }
  0x2a   : > { %s177_s22 = sshll.u32 %s167_s25, 4  ;;  %p758_p2 = pnand %p441_p4, %p93_p13  ;;  %s756_s22 = int_to_ptr.vmem [resolvable:$true] %s177_s22 }
  0x2b   : > { %s164_s27 = scalar_lea.sflag [#allocation4], %s163_s9  ;;  %s511_s29 = scalar_lea.hbm %s754_s20, 128 }
  0x2c   : > { %p512_p11 = scmp.ne.s32.totalorder %s754_s20, %s511_s29  ;;  %p513_p12 = pneg %p758_p2 }
  0x2d   : > { %s516_s6 = scalar_lea.hbm %s858_s2, 256  ;;  %p517_p7 = scmp.lt.u32.totalorder %s754_s20, %s858_s2 }
  0x2e   : > { %p514_p3 = pnand %p513_p12, %p512_p11  ;;  %p518_p10 = scmp.lt.u32.totalorder %s516_s6, %s511_s29 }
  0x2f   : > { %p520_p4 = scmp.lt.u32.totalorder %s511_s29, %s754_s20 }
  0x30   : > { %p515_p5 = pneg %p514_p3  ;;  %p519_p6 = por %p518_p10, %p517_p7 }
  0x32   : > { %p521_p9 = por %p520_p4, %p519_p6 }
  0x34   : > { %p522_p13 = pnand %p521_p9, %p515_p5 }
  0x36   : > { %525 = shalt.err (!%p522_p13)
}
  0x37   : > { %s526_s9 = scalar_lea.vmem %s756_s22, 128  ;;  %s630_s12 = smov [#allocation7]  }
  0x38   : > { %p527_p11 = scmp.ne.s32.totalorder %s756_s22, %s526_s9  ;;  %s531_s13 = sshll.u32 %s630_s12, 4  ;;  %s532_s13 = int_to_ptr.vmem [resolvable:$false] %s531_s13 }
  0x39   : > { %s533_s1 = scalar_lea.vmem %s532_s13, 256  ;;  %p534_p1 = scmp.lt.s32.totalorder %s756_s22, %s532_s13 }
  0x3a   : > { %p529_p3 = pnand %p527_p11, %p513_p12  ;;  %p535_p7 = scmp.lt.s32.totalorder %s533_s1, %s526_s9 }
  0x3c   : > { %p530_p0 = pneg %p529_p3  ;;  %p536_p10 = por %p535_p7, %p534_p1 }
  0x3e   : > { %p537_p6 = pnand %p536_p10, %p530_p0 }
  0x40   : > { %540 = shalt.err (!%p537_p6)
}
  0x41   : > { %435 = dma.hbm_to_vmem [thread:$0]  (!%p758_p2), %s754_s20, 128, %s756_s22, %s164_s27  }
  0x42   : > { %186 = sbr.rel (%p713_p8) target bundleno = 134 (0x86), region = 32  ;;  %p872_p12 = scmp.ne.s32.totalorder (!%p713_p8), %s864_s21, 0 }
  0x49   : > { %594 = dma.done.wait (%p872_p12), [#allocation6], 16  }
  0x4a   : > { %596 = vsyncadd (%p872_p12), [#allocation6], 4294967280  ;;  %s794_s25 = sand.u32 1, %s611_s15   ;;  %p873_p1 = scmp.ne.s32.totalorder %s866_s23, 0 }
  0x4b   : > { %s405_s29 = sshll.u32 %s794_s25, 3  ;;  %s193_s26 = scalar_lea.sflag [#allocation4], %s794_s25 }
  0x4c   : > { %s196_s4 = scalar_lea.vmem [#allocation7], %s405_s29 }
  0x4d   : > { %598 = dma.done.wait (%p873_p1), %s193_s26, 128  }
  0x4e   : > { %600 = vsyncadd (%p873_p1), %s193_s26, 4294967168 }
  0x4f   : > { %201 = sfence }
  0x50   : > { %s223_s28 = sld [smem:[#allocation3]]  ;;  %s407_s20 = sld [smem:[#allocation3 + $0x1]]  ;;  %v222_v0 = vld [vmem:[%s196_s4] sm:$0xff]  ;;  %v631_v18 = vmov 1966171168   ;;  %v265_v20 = vlaneseq }
  0x51   : > { %s409_s22 = sld [smem:[#allocation3 + $0x2]]  ;;  %s411_s21 = sld [smem:[#allocation3 + $0x3]]  ;;  %v263_v19 = vunpack.c.l.s4 %v631_v18 }
  0x52   : > { %s250_s27 = sld [smem:[#allocation2]]  ;;  %s406_s23 = sshll.u32 %s794_s25, 1  ;;  %v266_v22 = vshrl.u32 %v265_v20, 7  ;;  %vm279_vm2 = vcmp.lt.s32.totalorder %v265_v20, 256 }
  0x53   : > { %v264_v21 = vunpack.c.0.s8 %v263_v19  ;;  %s219_s5 = scalar_lea.vmem [#allocation8], %s406_s23  ;;  %s419_s7 = sshll.u32 %s619_s17, 5 }
  0x54   : > { %s299_s6 = sshll.u32 %s219_s5, 4  ;;  %s809_s12 = scalar_lea.hbm %s859_s3, %s419_s7  ;;  %s804_s6 = int_to_ptr.vmem [resolvable:$true] %s299_s6 }
  0x55   : > { %v267_v26 = vsub.s32 %v264_v21, %v266_v22  ;;  %s283_s13 = scalar_lea.sflag [#allocation5], %s794_s25  ;;  %s541_s1 = scalar_lea.vmem %s804_s6, 32 }
  0x56   : > { %v224_v1 = vstv %s223_s28  ;;  %v227_v2 = vstv %s407_s20  ;;  %p542_p8 = scmp.ne.s32.totalorder %s804_s6, %s541_s1  ;;  %p874_p0 = scmp.ne.s32.totalorder %s870_s8, 0 }
  0x57   : > { %v225_v3 = vmul.f32 %v224_v1, %v222_v0  ;;  %v228_v4 = vmul.f32 %v227_v2, %v222_v0  ;;  %v235_v5 = vstv %s409_s22  ;;  %v243_v6 = vstv %s411_s21  ;;  %s632_s17 = smov [#allocation8]  }
  0x58   : > { %v236_v7 = vmul.f32 %v235_v5, %v222_v0  ;;  %v244_v8 = vmul.f32 %v243_v6, %v222_v0  ;;  %v251_v14 = vstv %s250_s27  ;;  %p543_p2 = pnand %p542_p8, %p874_p0  ;;  %s545_s29 = sshll.u32 %s632_s17, 4  ;;  %s546_s29 = int_to_ptr.vmem [resolvable:$false] %s545_s29 }
  0x59   : > { %v408_v9 = vrot.slane %v228_v4, 9  ;;  %s547_s26 = scalar_lea.vmem %s546_s29, 64  ;;  %p548_p4 = scmp.lt.s32.totalorder %s804_s6, %s546_s29 }
  0x5a   : > { %v410_v10 = vrot.slane %v236_v7, 10  ;;  %v412_v12 = vrot.slane %v244_v8, 11  ;;  %p544_p5 = pneg %p543_p2  ;;  %p549_p9 = scmp.lt.s32.totalorder %s547_s26, %s541_s1 }
  0x5b   : > { %v233_v11 = vadd.f32 %v408_v9, %v225_v3 }
  0x5c   : > { %p550_p13 = por %p549_p9, %p548_p4 }
  0x5d   : > { %v241_v13 = vadd.f32 %v410_v10, %v233_v11 }
  0x5e   : > { %p551_p11 = pnand %p550_p13, %p544_p5 }
  0x5f   : > { %v249_v15 = vadd.f32 %v412_v12, %v241_v13 }
  0x61   : > { %v252_v16 = vadd.f32 %v251_v14, %v249_v15 }
  0x63   : > { %v253_v17 = vmax.f32 %v252_v16, 0.0 }
  0x65   : > { %494 = vrsqrt.f32 %v253_v17  ;;  %vm256_vm0 = vcmp.eq.f32.partialorder %v253_v17, inf  ;;  %v259_v24 = vand.u32 2147483648, %v253_v17  ;;  %vm258_vm1 = vcmp.eq.f32.partialorder %v253_v17, 0.0 }
  0x6f   : > { %v495_v23 = vpop.eup %494 }
  0x70   : > { %v255_v25 = vmul.f32 %v495_v23, %v253_v17 }
  0x72   : > { %v257_v27 = vsel %vm256_vm0, %v253_v17, %v255_v25 }
  0x73   : > { %v260_v28 = vsel %vm258_vm1, %v259_v24, %v257_v27 }
  0x74   : > { %v268_v29 = vrot.slane %v260_v28, %v267_v26 }
  0x76   : > { %v275_v30 = vrot.slane %v268_v29, %v267_v26 }
  0x78   : > { %281 = vst.msk [vmem:[%s219_s5] sm:$0x3] %vm279_vm2, %v275_v30 }
  0x79   : > { %554 = shalt.err (!%p551_p11)
}
  0x7a   : > { %s555_s25 = scalar_lea.hbm %s809_s12, 32  ;;  %s559_s20 = scalar_lea.hbm %s859_s3, 64 }
  0x7b   : > { %p556_p3 = scmp.ne.s32.totalorder %s809_s12, %s555_s25  ;;  %p560_p6 = scmp.lt.u32.totalorder %s809_s12, %s859_s3 }
  0x7c   : > { %p561_p12 = scmp.lt.u32.totalorder %s559_s20, %s555_s25  ;;  %p563_p8 = scmp.lt.u32.totalorder %s555_s25, %s809_s12 }
  0x7d   : > { %p557_p7 = pnand %p556_p3, %p874_p0 }
  0x7e   : > { %p562_p1 = por %p561_p12, %p560_p6 }
  0x7f   : > { %p558_p10 = pneg %p557_p7 }
  0x80   : > { %p564_p2 = por %p563_p8, %p562_p1 }
  0x82   : > { %p565_p5 = pnand %p564_p2, %p558_p10 }
  0x84   : > { %568 = shalt.err (!%p565_p5)
}
  0x85   : > { %426 = dma.vmem_to_hbm [thread:$0]  (%p874_p0), %s804_s6, 32, %s809_s12, %s283_s13  }
  0x86 PF: > { %s311_s27 = sand.u32 1, %s607_s14   ;;  %p875_p4 = scmp.ne.s32.totalorder %s867_s24, 0 }
  0x87   : > { %p876_p9 = scmp.ge.s32.totalorder %s627_s19, 2  ;;  %s312_s23 = scalar_lea.sflag [#allocation5], %s311_s27 }
  0x89   : > { %p437_p13 = pnand %p876_p9, %p875_p4 }
  0x8b   : > { %602 = dma.done.wait (!%p437_p13), %s312_s23, 32  }
  0x8c   : > { %604 = vsyncadd (!%p437_p13), %s312_s23, 4294967264  ;;  %s21_s19 = sadd.s32 1, %s627_s19   ;;  %s877_s14 = smov %s611_s15 }
  0x8d   : > { %p18_p11 = scmp.ge.s32.totalorder %s21_s19, 4   ;;  %s878_s15 = smov %s615_s16 }
  0x8e   : > { %s879_s16 = smov %s748_s10  ;;  %s880_s17 = smov %s623_s18 }
  0x8f   : > { %s881_s18 = smov %s883_s30  ;;  %20 = sbr.rel (!%p18_p11) target bundleno = 9 (0x9), region = 82 }
  0x96   :  { %317 = vsyncpa [#allocation4], 1 }
  0x97   :  { %319 = vsyncpa [#allocation4 + $0x1], 1 }
  0x98   :  { %320 = vsyncpa [#allocation5], 1 }
  0x99   :  { %322 = vsyncpa [#allocation5 + $0x1], 1 }
  0x9a   :  { %323 = vsyncpa [#allocation6], 1 }
  0x9b   :  { %325 = vsyncpa [#allocation6 + $0x1], 1 }

</bundles_post_ra>
